<compile_context>
chip_gen: v5e
topology: v5e:2x2
jax: 0.10.0
libtpu: 0.0.40
codegen_flags: <defaults>
</compile_context>

<pallas_src>
import math
import functools

import jax
import jax.numpy as jnp
from jax.experimental import pallas as pl
from jax.experimental.pallas import tpu as pltpu


def _ffn_kernel(x_ref, w1_ref, b1_ref, w2_ref, b2_ref, o_ref, acc_ref, *,
                matmul_dtype):
    # x_ref:  (tm, E)   row tile of flattened tokens (original dtype)
    # w1_ref: (E, tH)   streamed block of first Linear weight (in, out)
    # b1_ref: (1, tH)
    # w2_ref: (tH, E)   streamed block of second Linear weight (in, out)
    # b2_ref: (1, E)
    # o_ref:  (tm, E)
    # acc_ref:(tm, E)   f32 accumulator, lives across the h grid axis
    h_idx = pl.program_id(1)

    @pl.when(h_idx == 0)
    def _():
        acc_ref[...] = jnp.zeros_like(acc_ref)

    # ---- Linear 1 on this hidden chunk (MXU, f32 accumulate) ----
    x = x_ref[...].astype(matmul_dtype)
    hidden = jnp.dot(x, w1_ref[...], preferred_element_type=jnp.float32)
    hidden = hidden + b1_ref[...].astype(jnp.float32)          # (tm, tH) f32

    # ---- GELU, tanh approximation (matches the PyTorch GELU module) ----
    # 0.5 * x * (1 + tanh(sqrt(2/pi) * (x + 0.044715 * x^3)))
    c = math.sqrt(2.0 / math.pi)
    g = 0.5 * hidden * (1.0 + jnp.tanh(c * (hidden + 0.044715 * hidden * hidden * hidden)))

    # ---- Linear 2 partial product, accumulated over the h axis ----
    acc_ref[...] += jnp.dot(g.astype(matmul_dtype), w2_ref[...],
                            preferred_element_type=jnp.float32)

    @pl.when(h_idx == pl.num_programs(1) - 1)
    def _():
        out = acc_ref[...] + b2_ref[...].astype(jnp.float32)
        o_ref[...] = out.astype(o_ref.dtype)


def _round_up(n, m):
    return ((n + m - 1) // m) * m


def feed_forward(x, w1, b1, w2, b2, *, block_rows=512, block_hidden=512,
                 matmul_dtype=jnp.bfloat16):
    """FeedForward forward pass: GELU(x @ W1 + b1) @ W2 + b2.

    x:  (B, T, E)
    w1: (E, H) with H = 4*E, b1: (H,)
    w2: (H, E),              b2: (E,)
    Weights are stored as (in_features, out_features), i.e. x @ W matches
    PyTorch's x @ W.T for an nn.Linear weight of shape (out, in).
    """
    B, T, E = x.shape
    H = w1.shape[1]
    assert w1.shape == (E, H) and w2.shape == (H, E)
    assert b1.shape == (H,) and b2.shape == (E,)
    out_dtype = x.dtype
    matmul_dtype = jnp.dtype(matmul_dtype)

    # Flatten tokens: one lane-dense 2-D matmul problem, tiled over rows.
    M = B * T
    x2 = x.reshape(M, E)

    # Weights are re-read once per row tile -> cast them once in the wrapper so
    # the streamed DMA bytes are already narrow.  x is read exactly once, so it
    # is cast inside the kernel instead (no extra wrapper pass over it).
    if w1.dtype != matmul_dtype:
        w1 = w1.astype(matmul_dtype)
    if w2.dtype != matmul_dtype:
        w2 = w2.astype(matmul_dtype)

    # Row tile: MXU/roofline-friendly default, shrink (8-aligned) only for
    # tiny M.  Ragged last block is handled by Pallas (masked writes).
    block_rows = max(8, _round_up(block_rows, 8))
    tm = block_rows if M >= block_rows else _round_up(M, 8)
    grid_m = pl.cdiv(M, tm)

    # Hidden tile: multiple of 128 lanes that divides H exactly (the h axis is
    # a reduction, so out-of-bounds hidden columns are not allowed).
    if H % 128 == 0:
        tH = min(max(128, (block_hidden // 128) * 128), H)
        while H % tH != 0:
            tH -= 128
    else:
        tH = H
    grid_h = H // tH

    b1_2d = b1.reshape(1, H)
    b2_2d = b2.reshape(1, E)

    # ---- explicit scoped-VMEM budget (double-buffered tiles + scratch) ----
    itm = lambda a: jnp.dtype(a.dtype).itemsize
    need = 2 * (tm * E * itm(x2)                 # x tile
                + tm * E * jnp.dtype(out_dtype).itemsize   # out tile
                + E * tH * itm(w1)               # w1 block
                + tH * E * itm(w2)               # w2 block
                + tH * itm(b1_2d) + E * itm(b2_2d))
    need += tm * E * 4                           # f32 accumulator scratch
    need += 2 * tm * tH * 4                      # hidden / GELU f32 temporaries
    vmem_limit = int(min(max(int(need * 1.5) + (4 << 20), 16 << 20), 100 << 20))

    cost = pl.CostEstimate(
        flops=4 * M * E * H,                     # two matmuls, 2*M*E*H each
        transcendentals=M * H,                   # tanh
        bytes_accessed=(M * E * itm(x2) + M * E * jnp.dtype(out_dtype).itemsize
                        + grid_m * (E * H * itm(w1) + H * E * itm(w2)
                                    + H * itm(b1_2d) + E * itm(b2_2d))),
    )

    kernel = functools.partial(_ffn_kernel, matmul_dtype=matmul_dtype)

    out2 = pl.pallas_call(
        kernel,
        out_shape=jax.ShapeDtypeStruct((M, E), out_dtype),
        grid_spec=pltpu.PrefetchScalarGridSpec(
            num_scalar_prefetch=0,
            grid=(grid_m, grid_h),
            in_specs=[
                pl.BlockSpec((tm, E), lambda i, h: (i, 0)),   # x row tile
                pl.BlockSpec((E, tH), lambda i, h: (0, h)),   # w1 hidden block
                pl.BlockSpec((1, tH), lambda i, h: (0, h)),   # b1 hidden block
                pl.BlockSpec((tH, E), lambda i, h: (h, 0)),   # w2 hidden block
                pl.BlockSpec((1, E), lambda i, h: (0, 0)),    # b2
            ],
            out_specs=pl.BlockSpec((tm, E), lambda i, h: (i, 0)),
            scratch_shapes=[pltpu.VMEM((tm, E), jnp.float32)],
        ),
        compiler_params=pltpu.CompilerParams(
            dimension_semantics=("parallel", "arbitrary"),
            vmem_limit_bytes=vmem_limit),
        cost_estimate=cost,
    )(x2, w1, b1_2d, w2, b2_2d)

    return out2.reshape(B, T, E)


def _reference(x, w1, b1, w2, b2):
    """Pure-JAX reference mirroring the PyTorch FeedForward (tanh GELU)."""
    hp = jax.lax.Precision.HIGHEST
    h = jnp.dot(x, w1, precision=hp) + b1
    c = math.sqrt(2.0 / math.pi)
    g = 0.5 * h * (1.0 + jnp.tanh(c * (h + 0.044715 * h ** 3)))
    return jnp.dot(g, w2, precision=hp) + b2


if __name__ == "__main__":
    # Small shapes consistent with the module: emb_dim=64 -> hidden=4*64=256.
    B, T, E = 2, 8, 64
    H = 4 * E

    key = jax.random.PRNGKey(0)
    kx, k1, kb1, k2, kb2 = jax.random.split(key, 5)

    x = jax.random.normal(kx, (B, T, E), dtype=jnp.float32)
    w1 = jax.random.normal(k1, (E, H), dtype=jnp.float32) * 0.1
    b1 = jax.random.normal(kb1, (H,), dtype=jnp.float32) * 0.1
    w2 = jax.random.normal(k2, (H, E), dtype=jnp.float32) * 0.1
    b2 = jax.random.normal(kb2, (E,), dtype=jnp.float32) * 0.1

    ref = _reference(x, w1, b1, w2, b2)

    # Exact f32 path: block_rows=8 / block_hidden=128 exercise a 2x2 grid
    # (two row tiles x two hidden-reduction steps).
    out_f32 = feed_forward(x, w1, b1, w2, b2, block_rows=8, block_hidden=128,
                           matmul_dtype=jnp.float32)
    out_f32 = jax.block_until_ready(out_f32)
    assert out_f32.shape == (B, T, E)
    assert jnp.allclose(out_f32, ref, atol=1e-4, rtol=1e-4), "f32 mismatch vs reference"

    # Default bf16-MXU path (production setting); relaxed tolerance.
    out_bf16 = feed_forward(x, w1, b1, w2, b2, block_rows=8, block_hidden=128)
    out_bf16 = jax.block_until_ready(out_bf16)
    assert out_bf16.shape == (B, T, E)
    assert jnp.allclose(out_bf16, ref, atol=5e-2, rtol=5e-2), "bf16 mismatch vs reference"

    print("KERNEL_OK")
</pallas_src>

<mosaic_0001>
module attributes {stable_mosaic.version = 11 : i64} {
  func.func @_ffn_kernel(%arg0: i32, %arg1: i32, %arg2: memref<8x64xf32, #tpu.memory_space<vmem>>, %arg3: memref<64x128xf32, #tpu.memory_space<vmem>>, %arg4: memref<1x128xf32, #tpu.memory_space<vmem>>, %arg5: memref<128x64xf32, #tpu.memory_space<vmem>>, %arg6: memref<1x64xf32, #tpu.memory_space<vmem>>, %arg7: memref<8x64xf32, #tpu.memory_space<vmem>>, %arg8: memref<8x64xf32, #tpu.memory_space<vmem>>) attributes {dimension_semantics = [#tpu.dimension_semantics<parallel>, #tpu.dimension_semantics<arbitrary>], iteration_bounds = array<i64: 2, 2>, scalar_prefetch = 0 : i64, scratch_operands = 1 : i64, tpu.core_type = #tpu.core_type<tc>, window_params = [{transform_indices = @transform_0, window_bounds = array<i64: 8, 64>}, {transform_indices = @transform_1, window_bounds = array<i64: 64, 128>}, {transform_indices = @transform_2, window_bounds = array<i64: 1, 128>}, {transform_indices = @transform_3, window_bounds = array<i64: 128, 64>}, {pipeline_mode = #tpu.pipeline_mode<synchronous>, transform_indices = @transform_4, window_bounds = array<i64: 1, 64>}, {transform_indices = @transform_5, window_bounds = array<i64: 8, 64>}]} {
    %c0_i32 = arith.constant 0 : i32
    %0 = arith.cmpi eq, %arg1, %c0_i32 : i32
    %1 = arith.extui %0 : i1 to i32
    %c0_i32_0 = arith.constant 0 : i32
    %2 = arith.cmpi ne, %1, %c0_i32_0 : i32
    scf.if %2 {
      %cst_18 = arith.constant 0.000000e+00 : f32
      %30 = vector.broadcast %cst_18 : f32 to vector<8x64xf32>
      %c0_19 = arith.constant 0 : index
      %c0_20 = arith.constant 0 : index
      %31 = vector.load %arg8[%c0_19, %c0_20] : memref<8x64xf32, #tpu.memory_space<vmem>>, vector<8x64xf32>
      tpu.vector_store %arg8[%c0_19, %c0_20], %30 {strides = array<i32>} : memref<8x64xf32, #tpu.memory_space<vmem>>, vector<8x64xf32>,
    } else {
    }
    %c0 = arith.constant 0 : index
    %c0_1 = arith.constant 0 : index
    %3 = vector.load %arg2[%c0, %c0_1] : memref<8x64xf32, #tpu.memory_space<vmem>>, vector<8x64xf32>
    %c0_2 = arith.constant 0 : index
    %c0_3 = arith.constant 0 : index
    %4 = vector.load %arg3[%c0_2, %c0_3] : memref<64x128xf32, #tpu.memory_space<vmem>>, vector<64x128xf32>
    %cst = arith.constant dense<0.000000e+00> : vector<8x128xf32>
    %5 = tpu.matmul %3, %4, %cst {dimension_numbers = #tpu.dot_dimension_numbers<[1], [0], [0], [1], [0, 0, 1, 1], [], []>} : vector<8x64xf32>, vector<64x128xf32>, vector<8x128xf32> -> vector<8x128xf32>
    %c0_4 = arith.constant 0 : index
    %c0_5 = arith.constant 0 : index
    %6 = vector.load %arg4[%c0_4, %c0_5] : memref<1x128xf32, #tpu.memory_space<vmem>>, vector<1x128xf32>
    %7 = vector.broadcast %6 : vector<1x128xf32> to vector<8x128xf32>
    %8 = arith.addf %5, %7 : vector<8x128xf32>
    %cst_6 = arith.constant 5.000000e-01 : f32
    %9 = vector.broadcast %cst_6 : f32 to vector<8x128xf32>
    %10 = arith.mulf %9, %8 : vector<8x128xf32>
    %cst_7 = arith.constant 4.471500e-02 : f32
    %11 = vector.broadcast %cst_7 : f32 to vector<8x128xf32>
    %12 = arith.mulf %11, %8 : vector<8x128xf32>
    %13 = arith.mulf %12, %8 : vector<8x128xf32>
    %14 = arith.mulf %13, %8 : vector<8x128xf32>
    %15 = arith.addf %8, %14 : vector<8x128xf32>
    %cst_8 = arith.constant 0.797884583 : f32
    %16 = vector.broadcast %cst_8 : f32 to vector<8x128xf32>
    %17 = arith.mulf %16, %15 : vector<8x128xf32>
    %18 = math.tanh %17 : vector<8x128xf32>
    %cst_9 = arith.constant 1.000000e+00 : f32
    %19 = vector.broadcast %cst_9 : f32 to vector<8x128xf32>
    %20 = arith.addf %19, %18 : vector<8x128xf32>
    %21 = arith.mulf %10, %20 : vector<8x128xf32>
    %c0_10 = arith.constant 0 : index
    %c0_11 = arith.constant 0 : index
    %22 = vector.load %arg8[%c0_10, %c0_11] : memref<8x64xf32, #tpu.memory_space<vmem>>, vector<8x64xf32>
    %c0_12 = arith.constant 0 : index
    %c0_13 = arith.constant 0 : index
    %23 = vector.load %arg5[%c0_12, %c0_13] : memref<128x64xf32, #tpu.memory_space<vmem>>, vector<128x64xf32>
    %cst_14 = arith.constant dense<0.000000e+00> : vector<8x64xf32>
    %24 = tpu.matmul %21, %23, %cst_14 {dimension_numbers = #tpu.dot_dimension_numbers<[1], [0], [0], [1], [0, 0, 1, 1], [], []>} : vector<8x128xf32>, vector<128x64xf32>, vector<8x64xf32> -> vector<8x64xf32>
    %25 = arith.addf %22, %24 : vector<8x64xf32>
    %c0_15 = arith.constant 0 : index
    %c0_16 = arith.constant 0 : index
    %26 = vector.load %arg8[%c0_15, %c0_16] : memref<8x64xf32, #tpu.memory_space<vmem>>, vector<8x64xf32>
    tpu.vector_store %arg8[%c0_15, %c0_16], %25 {strides = array<i32>} : memref<8x64xf32, #tpu.memory_space<vmem>>, vector<8x64xf32>,
    %c1_i32 = arith.constant 1 : i32
    %27 = arith.cmpi eq, %arg1, %c1_i32 : i32
    %28 = arith.extui %27 : i1 to i32
    %c0_i32_17 = arith.constant 0 : i32
    %29 = arith.cmpi ne, %28, %c0_i32_17 : i32
    scf.if %29 {
      %c0_18 = arith.constant 0 : index
      %c0_19 = arith.constant 0 : index
      %30 = vector.load %arg8[%c0_18, %c0_19] : memref<8x64xf32, #tpu.memory_space<vmem>>, vector<8x64xf32>
      %c0_20 = arith.constant 0 : index
      %c0_21 = arith.constant 0 : index
      %31 = vector.load %arg6[%c0_20, %c0_21] : memref<1x64xf32, #tpu.memory_space<vmem>>, vector<1x64xf32>
      %32 = vector.broadcast %31 : vector<1x64xf32> to vector<8x64xf32>
      %33 = arith.addf %30, %32 : vector<8x64xf32>
      %c0_22 = arith.constant 0 : index
      %c0_23 = arith.constant 0 : index
      %34 = vector.load %arg7[%c0_22, %c0_23] : memref<8x64xf32, #tpu.memory_space<vmem>>, vector<8x64xf32>
      tpu.vector_store %arg7[%c0_22, %c0_23], %33 {strides = array<i32>} : memref<8x64xf32, #tpu.memory_space<vmem>>, vector<8x64xf32>,
    } else {
    }
    return
  }
  func.func @transform_0(%arg0: i32, %arg1: i32) -> (i32, i32) {
    %c0_i32 = arith.constant 0 : i32
    %c0_i32_0 = arith.constant 0 : i32
    return %arg0, %c0_i32 : i32, i32
  }
  func.func @transform_1(%arg0: i32, %arg1: i32) -> (i32, i32) {
    %c0_i32 = arith.constant 0 : i32
    %c0_i32_0 = arith.constant 0 : i32
    return %c0_i32, %arg1 : i32, i32
  }
  func.func @transform_2(%arg0: i32, %arg1: i32) -> (i32, i32) {
    %c0_i32 = arith.constant 0 : i32
    %c0_i32_0 = arith.constant 0 : i32
    return %c0_i32, %arg1 : i32, i32
  }
  func.func @transform_3(%arg0: i32, %arg1: i32) -> (i32, i32) {
    %c0_i32 = arith.constant 0 : i32
    %c0_i32_0 = arith.constant 0 : i32
    return %arg1, %c0_i32 : i32, i32
  }
  func.func @transform_4(%arg0: i32, %arg1: i32) -> (i32, i32) {
    %c0_i32 = arith.constant 0 : i32
    %c0_i32_0 = arith.constant 0 : i32
    %c0_i32_1 = arith.constant 0 : i32
    return %c0_i32, %c0_i32_0 : i32, i32
  }
  func.func @transform_5(%arg0: i32, %arg1: i32) -> (i32, i32) {
    %c0_i32 = arith.constant 0 : i32
    %c0_i32_0 = arith.constant 0 : i32
    return %arg0, %c0_i32 : i32, i32
  }
}

</mosaic_0001>

<bundles_post_ra>
// kernel: tpu_custom_call.1
= control target key start
LH: loop header
LB: loop body
LE: loop exit
PB: predicated region body
PF: predicated region fallthrough
CT: control target
= control target key end

     0   :  { %s1044_s0 = inlined_call_operand.vmem [shape: f32[16,64], index: 0, kind: input, shape index: {}]   ;;  %s1045_s1 = inlined_call_operand.vmem [shape: f32[64,256], index: 1, kind: input, shape index: {}]   ;;  %s1046_s2 = inlined_call_operand.vmem [shape: f32[1,256], index: 2, kind: input, shape index: {}]   ;;  %s1047_s3 = inlined_call_operand.vmem [shape: f32[256,64], index: 3, kind: input, shape index: {}]   ;;  %s1048_s4 = inlined_call_operand.vmem [shape: f32[1,64], index: 4, kind: input, shape index: {}]   ;;  %s1049_s5 = inlined_call_operand.hbm [shape: f32[16,64], index: 5, kind: output, shape index: {}]  }
   0x1   :  { %1056 = sst [smem:[#allocation14_spill]] %s1045_s1 }
   0x2   :  { %10 = vsyncpa [#allocation5], 0 }
   0x3   :  { %12 = vsyncpa [#allocation5 + $0x1], 0  ;;  %s832_s18 = smov 0   ;;  %s834_s19 = smov 0  }
   0x4   :  { %s836_s20 = smov 0   ;;  %s838_s21 = smov 0  }
   0x5   :  { %s840_s22 = smov 0   ;;  %s842_s23 = smov 0  }
   0x6   :  { %s844_s24 = smov 0   ;;  %s846_s25 = smov 0  }
   0x7   :  { %s848_s26 = smov 0   ;;  %s850_s27 = smov 0  }
   0x8 LB: > { %1057 = sst [smem:[#allocation7_spill]] %s779_s22  ;;  %s578_s28 = sadd.s32 4294967295, %s799_s27   ;;  %s799_s27 = sphi %s850_s27, %s18_s27   ;;  %s795_s26 = sphi %s848_s26, %s1075_s26   ;;  %s791_s25 = sphi %s846_s25, %s1074_s25   ;;  %s787_s24 = sphi %s844_s24, %s1073_s24   ;;  %s783_s23 = sphi %s842_s23, %s1072_s23   ;;  %s779_s22 = sphi %s840_s22, %s1079_s22   ;;  %s775_s21 = sphi %s838_s21, %s1070_s21   ;;  %s771_s20 = sphi %s836_s20, %s1078_s20   ;;  %s767_s19 = sphi %s834_s19, %s1077_s19   ;;  %s763_s18 = sphi %s832_s18, %s1076_s18  }
   0x9   : > { %1058 = sst [smem:[#allocation8_spill]] %s791_s25  ;;  %s579_s29 = sadd.s32 4294967294, %s799_s27  }
   0xa   : > { %1059 = sst [smem:[#allocation9_spill]] %s795_s26  ;;  %s27_s30 = sadd.s32 1, %s791_s25 }
   0xb   : > { %s30_s6 = sadd.s32 1, %s795_s26  ;;  %p28_p0 = scmp.ge.s32.totalorder %s27_s30, 2 }
   0xc   : > { %s63_s7 = sadd.s32 1, %s779_s22  ;;  %p70_p1 = scmp.ne.s32.totalorder %s779_s22, %s775_s21 }
   0xd   : > { %p71_p2 = scmp.eq.s32.totalorder %s799_s27, 0  ;;  %s1081_s30 = smov (%p28_p0, %s27_s30), 0 }
   0xe   : > { %1060 = sst [smem:[#allocation10_spill]] %s1081_s30  ;;  %s1083_s6 = smov (!%p28_p0, %s30_s6), %s795_s26 }
   0xf   : > { %s60_s8 = ssub.s32 %s791_s25, %s1081_s30  ;;  %p895_p3 = por %p71_p2, %p70_p1 }
  0x10   : > { %p32_p4 = scmp.ge.s32.totalorder %s1083_s6, 2  ;;  %p61_p5 = scmp.eq.s32.totalorder %s60_s8, 0 }
  0x11   : > { %s162_s10 = sadd.s32 1, %s771_s20  ;;  %p172_p6 = scmp.ne.s32.totalorder %s771_s20, %s767_s19 }
  0x12   : > { %s1085_s6 = smov (%p32_p4, %s1083_s6), 0  ;;  %p173_p7 = scmp.eq.s32.totalorder %s578_s28, 3 }
  0x13   : > { %1062 = sst [smem:[#allocation11_spill]] %s1085_s6  ;;  %s159_s12 = ssub.s32 %s795_s26, %s1085_s6 }
  0x14   : > { %s905_s11 = scalar_select %p61_p5, %s779_s22, %s63_s7  }
  0x15   : > { %p160_p8 = scmp.eq.s32.totalorder %s159_s12, 0  ;;  %p178_p9 = scmp.ne.s32.totalorder %s767_s19, %s763_s18 }
  0x16   : > { %1063 = sst [smem:[#allocation12_spill]] %s905_s11  ;;  %p911_p10 = por %p173_p7, %p172_p6 }
  0x17   : > { %p179_p11 = scmp.eq.s32.totalorder %s579_s29, 3  ;;  %p581_p13 = scmp.ge.s32.totalorder %s799_s27, 4 }
  0x18   : > { %s916_s14 = scalar_select %p160_p8, %s771_s20, %s162_s10  }
  0x19   : > { %p918_p12 = por %p179_p11, %p178_p9  ;;  %198 = sbr.rel (%p581_p13) target bundleno = 48 (0x30), region = 20 }
  0x1a   : > { %1065 = sst [smem:[#allocation13_spill]] %s916_s14 }
  0x1e   : > { %208 = sbr.rel (!%p895_p3) target bundleno = 48 (0x30), region = 28  ;;  %s210_s16 = sand.u32 (%p895_p3), 1, %s779_s22  }
  0x1f   : > { %s583_s17 = sshll.u32 (%p895_p3), %s791_s25, 3  ;;  %s582_s28 = sshll.u32 (%p895_p3), %s210_s16, 6 }
  0x20   : > { %s1067_s1 = sld [smem:[#allocation14_spill]] (%p895_p3)  ;;  %s212_s10 = scalar_lea.vmem (%p895_p3), [#allocation3], %s582_s28 }
  0x26   : > { %s214_s29 = scalar_lea.vmem %s1067_s1, %s583_s17 }
  0x27   : > { %v257_v0 = vld [vmem:[%s214_s29] sm:$0xff]  ;;  %v259_v1 = vld [vmem:[%s214_s29 + $0x10] sm:$0xff] }
  0x28   : > { %v261_v2 = vld [vmem:[%s214_s29 + $0x20] sm:$0xff]  ;;  %258 = vst [vmem:[%s212_s10] sm:$0xff] %v257_v0  ;;  %v263_v3 = vld [vmem:[%s214_s29 + $0x30] sm:$0xff] }
  0x29   : > { %260 = vst [vmem:[%s212_s10 + $0x8] sm:$0xff] %v259_v1  ;;  %v265_v4 = vld [vmem:[%s214_s29 + $0x40] sm:$0xff]  ;;  %v267_v5 = vld [vmem:[%s214_s29 + $0x50] sm:$0xff] }
  0x2a   : > { %262 = vst [vmem:[%s212_s10 + $0x10] sm:$0xff] %v261_v2  ;;  %v269_v6 = vld [vmem:[%s214_s29 + $0x60] sm:$0xff]  ;;  %v271_v7 = vld [vmem:[%s214_s29 + $0x70] sm:$0xff] }
  0x2b   : > { %264 = vst [vmem:[%s212_s10 + $0x18] sm:$0xff] %v263_v3 }
  0x2c   : > { %266 = vst [vmem:[%s212_s10 + $0x20] sm:$0xff] %v265_v4 }
  0x2d   : > { %268 = vst [vmem:[%s212_s10 + $0x28] sm:$0xff] %v267_v5 }
  0x2e   : > { %270 = vst [vmem:[%s212_s10 + $0x30] sm:$0xff] %v269_v6 }
  0x2f   : > { %272 = vst [vmem:[%s212_s10 + $0x38] sm:$0xff] %v271_v7 }
  0x30 PF: > { %p584_p0 = scmp.ge.s32.totalorder %s799_s27, 1  ;;  %p292_p1 = scmp.lt.s32.totalorder %s799_s27, 5 }
  0x32   : > { %p293_p2 = pnand %p584_p0, %p292_p1 }
  0x33   : > { %s299_s9 = sand.u32 (!%p293_p2), 1, %s775_s21   ;;  %s1051_s12 = sand.u32 (!%p293_p2), 1, %s767_s19  }
  0x34   : > { %296 = sbr.rel (%p293_p2) target bundleno = 387 (0x183), region = 74  ;;  %s585_s16 = sshll.u32 (!%p293_p2), %s299_s9, 6 }
  0x35   : > { %s936_s17 = sshll.u32 (!%p293_p2), %s1051_s12, 3  ;;  %p338_p3 = scmp.lt.s32.totalorder (!%p293_p2), %s787_s24, 1 }
  0x36   : > { %p342_p4 = scmp.lt.s32.totalorder (!%p293_p2), %s783_s23, 1  ;;  %s588_s28 = sshll.u32 (!%p293_p2), %s783_s23, 4 }
  0x37   : > { %p346_p5 = scmp.lt.s32.totalorder (!%p293_p2), %s588_s28, 31  ;;  %s301_s22 = scalar_lea.vmem (!%p293_p2), [#allocation3], %s585_s16 }
  0x38   : > { %s337_s14 = scalar_lea.vmem (!%p293_p2), [#allocation4], %s936_s17  ;;  %p590_p6 = scmp.ne.s32.totalorder (!%p293_p2), %s783_s23, 0 }
  0x39   : > { %s339_s7 = scalar_select %p338_p3, %s787_s24, 1 }
  0x3a   : > { %s943_s8 = scalar_select %p342_p4, %s783_s23, 1 }
  0x3b   : > { %s587_s29 = sshll.u32 %s339_s7, 3  ;;  %s1087_s28 = smov (!%p346_p5, %s588_s28), 31 }
  0x3c   : > { %s948_s6 = scalar_lea.vmem %s1044_s0, %s587_s29  ;;  %s344_s12 = scalar_lea.vmem %s1046_s2, %s943_s8 }
  0x3d   : > { %s589_s30 = sshll.u32 %s1087_s28, 3  ;;  %354 = sbr.rel (%p590_p6) target bundleno = 68 (0x44), region = 82 }
  0x3e   : > { %s957_s11 = scalar_lea.vmem %s1047_s3, %s589_s30 }
  0x42   : > { %vm355_vm0 = vcmask 523264   ;;  %v801_v8 = vmov 0.0  }
  0x43   : > { %356 = vst.msk [vmem:[#allocation2] sm:$0xff] %vm355_vm0, %v801_v8 }
  0x44 PF: > { %v365_v9 = vld [vmem:[%s301_s22 + $0x38] sm:$0xff]  ;;  %v364_v10 = vld [vmem:[%s301_s22 + $0x30] sm:$0xff]  ;;  %v363_v11 = vld [vmem:[%s301_s22 + $0x28] sm:$0xff]  ;;  %vm370_vm1 = vcmask 523264   ;;  %p592_p7 = scmp.ne.s32.totalorder %s783_s23, 1 }
  0x45   : > { %382 = vmatpush.msra.mxu0 %v365_v9  ;;  %v419_v12 = vld [vmem:[%s957_s11 + $0x78] sm:$0xff]  ;;  %v418_v13 = vld [vmem:[%s957_s11 + $0x70] sm:$0xff]  ;;  %v362_v14 = vld [vmem:[%s301_s22 + $0x20] sm:$0xff] }
  0x46   : > { %420 = vmatpush.msra.mxu1 %v419_v12  ;;  %v417_v15 = vld [vmem:[%s957_s11 + $0x68] sm:$0xff]  ;;  %v361_v16 = vld [vmem:[%s301_s22 + $0x18] sm:$0xff]  ;;  %v360_v18 = vld [vmem:[%s301_s22 + $0x10] sm:$0xff] }
  0x47   : > { %383 = vmatpush.msra.mxu0 %v364_v10  ;;  %v416_v17 = vld [vmem:[%s957_s11 + $0x60] sm:$0xff]  ;;  %v359_v19 = vld [vmem:[%s301_s22 + $0x8] sm:$0xff]  ;;  %v358_v20 = vld [vmem:[%s301_s22] sm:$0xff] }
  0x48   : > { %421 = vmatpush.msra.mxu1 %v418_v13  ;;  %v357_v21 = vld [vmem:[%s948_s6] sm:$0xff]  ;;  %v415_v22 = vld [vmem:[%s957_s11 + $0x58] sm:$0xff]  ;;  %v414_v23 = vld [vmem:[%s957_s11 + $0x50] sm:$0xff] }
  0x49   : > { %384 = vmatpush.msra.mxu0 %v363_v11  ;;  %v413_v24 = vld [vmem:[%s957_s11 + $0x48] sm:$0xff]  ;;  %v412_v25 = vld [vmem:[%s957_s11 + $0x40] sm:$0xff]  ;;  %v411_v26 = vld [vmem:[%s957_s11 + $0x38] sm:$0xff] }
  0x4a   : > { %422 = vmatpush.msra.mxu1 %v417_v15  ;;  %v410_v27 = vld [vmem:[%s957_s11 + $0x30] sm:$0xff]  ;;  %v409_v28 = vld [vmem:[%s957_s11 + $0x28] sm:$0xff]  ;;  %v408_v29 = vld [vmem:[%s957_s11 + $0x20] sm:$0xff] }
  0x4b   : > { %385 = vmatpush.msra.mxu0 %v362_v14  ;;  %v407_v30 = vld [vmem:[%s957_s11 + $0x18] sm:$0xff]  ;;  %v406_v31 = vld [vmem:[%s957_s11 + $0x10] sm:$0xff]  ;;  %v405_v32 = vld [vmem:[%s957_s11 + $0x8] sm:$0xff] }
  0x4c   : > { %423 = vmatpush.msra.mxu1 %v416_v17  ;;  %v404_v33 = vld [vmem:[%s957_s11] sm:$0xff] }
  0x4d   : > { %386 = vmatpush.msra.mxu0 %v361_v16  ;;  %v685_v34 = vld [vmem:[%s344_s12] ss:$0 sm:$0xff] }
  0x4e   : > { %424 = vmatpush.msra.mxu1 %v415_v22  ;;  %v403_v46 = vld [vmem:[#allocation2] sm:$0xff] }
  0x4f   : > { %387 = vmatpush.msra.mxu0 %v360_v18 }
  0x50   : > { %425 = vmatpush.msra.mxu1 %v414_v23 }
  0x51   : > { %388 = vmatpush.msra.mxu0 %v359_v19 }
  0x52   : > { %426 = vmatpush.msra.mxu1 %v413_v24 }
  0x53   : > { %389 = vmatpush.msra.mxu0 %v358_v20 }
  0x54   : > { %591 = vmatmul.msk.f32.vlgmr.msra.gmra.mxu0 %vm370_vm1, %v357_v21  ;;  %427 = vmatpush.msra.mxu1 %v412_v25 }
  0x56   : > { %428 = vmatpush.msra.mxu1 %v411_v26 }
  0x58   : > { %429 = vmatpush.msra.mxu1 %v410_v27 }
  0x5a   : > { %430 = vmatpush.msra.mxu1 %v409_v28 }
  0x5c   : > { %431 = vmatpush.msra.mxu1 %v408_v29 }
  0x5e   : > { %432 = vmatpush.msra.mxu1 %v407_v30 }
  0x60   : > { %433 = vmatpush.msra.mxu1 %v406_v31 }
  0x62   : > { %434 = vmatpush.msra.mxu1 %v405_v32 }
  0x64   : > { %435 = vmatpush.msra.mxu1 %v404_v33 }
  0xd1   : > { %v391_v35 = vpop.f32.mrf.mxu0 }
  0xd2   : > { %v392_v36 = vadd.f32 %v685_v34, %v391_v35 }
  0xd4   : > { %v395_v37 = vmul.f32 0.044715, %v392_v36  ;;  %v394_v43 = vmul.f32 0.5, %v392_v36 }
  0xd6   : > { %v396_v38 = vmul.f32 %v395_v37, %v392_v36 }
  0xd8   : > { %v397_v39 = vmul.f32 %v396_v38, %v392_v36 }
  0xda   : > { %v398_v40 = vadd.f32 %v397_v39, %v392_v36 }
  0xdc   : > { %v399_v41 = vmul.f32 0.7978846, %v398_v40 }
  0xde   : > { %686 = vtanh.f32 %v399_v41 }
  0xe4   : > { %v687_v42 = vpop.eup %686 }
  0xe5   : > { %v401_v44 = vadd.f32 1.0, %v687_v42 }
  0xe7   : > { %v402_v45 = vmul.f32 %v401_v44, %v394_v43 }
  0xe9   : > { %436 = vmatmul.f32.vlgmr.msra.gmra.mxu1 %v402_v45 }
 0x165   : > { %445 = sbr.rel (%p592_p7) target bundleno = 372 (0x174), region = 86 }
 0x166   : > { %v437_v47 = vpop.f32.mrf.mxu1 }
 0x167   : > { %v440_v48 = vadd.f32 %v437_v47, %v403_v46 }
 0x169   : > { %441 = vst.msk [vmem:[#allocation2] sm:$0xff] %vm370_vm1, %v440_v48 }
 0x16a   : > { %v688_v50 = vld [vmem:[%s1048_s4] ss:$0 sm:$0xff] }
 0x170   : > { %v446_v49 = vld [vmem:[#allocation2] sm:$0xff] }
 0x171   : > { %v451_v51 = vadd.f32 %v688_v50, %v446_v49 }
 0x173   : > { %452 = vst.msk [vmem:[%s337_s14] sm:$0xff] %vm370_vm1, %v451_v51 }
 0x174 PF: > { %s594_s30 = sshll.u32 %s787_s24, 3  ;;  %s466_s12 = sshll.u32 %s337_s14, 4  ;;  %s467_s12 = int_to_ptr.vmem [resolvable:$true] %s466_s12 }
 0x175   : > { %s464_s23 = scalar_lea.hbm %s1049_s5, %s594_s30  ;;  %s1068_s28 = sand.u32 1, %s767_s19  }
 0x176   : > { %s468_s16 = sshll.u32 %s464_s23, 4  ;;  %s454_s7 = scalar_lea.sflag [#allocation5], %s1068_s28  ;;  %s469_s16 = int_to_ptr.hbm [resolvable:$true] %s468_s16 }
 0x177   : > { %s703_s8 = sshra.s32 %s469_s16, 4  ;;  %s709_s21 = scalar_lea.hbm %s1049_s5, 16  ;;  %s704_s8 = int_to_ptr.hbm [resolvable:$true] %s703_s8 }
 0x178   : > { %s705_s29 = scalar_lea.hbm %s704_s8, 8  ;;  %p710_p13 = scmp.lt.s32.totalorder %s704_s8, %s1049_s5 }
 0x179   : > { %p706_p8 = scmp.ne.s32.totalorder %s704_s8, %s705_s29  ;;  %p711_p0 = scmp.lt.s32.totalorder %s709_s21, %s705_s29 }
 0x17b   : > { %p707_p9 = pnand %p706_p8, %p911_p10  ;;  %p712_p1 = por %p711_p0, %p710_p13 }
 0x17d   : > { %p708_p11 = pneg %p707_p9 }
 0x17f   : > { %p713_p2 = pnand %p712_p1, %p708_p11 }
 0x181   : > { %716 = shalt.err (!%p713_p2)
}
 0x182   : > { %597 = dma.vmem_to_hbm [thread:$0]  (%p911_p10), %s467_s12, 128, %s469_s16, %s454_s7  }
 0x183 PF: > { %p603_p3 = scmp.ge.s32.totalorder %s799_s27, 2  ;;  %s480_s14 = sand.u32 1, %s763_s18  }
 0x184   : > { %s481_s17 = scalar_lea.sflag [#allocation5], %s480_s14 }
 0x185   : > { %p600_p4 = pnand %p603_p3, %p918_p12 }
 0x187   : > { %p601_p5 = pneg %p600_p4 }
 0x189   : > { %758 = dma.done.wait (%p601_p5), %s481_s17, 128  }
 0x18a   : > { %760 = vsyncadd (%p601_p5), %s481_s17, 4294967168  ;;  %s18_s27 = sadd.s32 1, %s799_s27   ;;  %s1069_s22 = sld [smem:[#allocation13_spill]] }
 0x18b   : > { %p15_p6 = scmp.ge.s32.totalorder %s18_s27, 6   ;;  %s1070_s21 = sld [smem:[#allocation7_spill]] }
 0x18c   : > { %s1071_s13 = sld [smem:[#allocation12_spill]]  ;;  %s1076_s18 = smov %s767_s19 }
 0x18d   : > { %s1072_s23 = sld [smem:[#allocation8_spill]]  ;;  %s1077_s19 = smov %s771_s20 }
 0x18e   : > { %s1073_s24 = sld [smem:[#allocation9_spill]]  ;;  %17 = sbr.rel (!%p15_p6) target bundleno = 8 (0x8), region = 135 }
 0x18f   : > { %s1074_s25 = sld [smem:[#allocation10_spill]] }
 0x190   : > { %s1075_s26 = sld [smem:[#allocation11_spill]]  ;;  %s1078_s20 = smov %s1069_s22 }
 0x192   : > { %s1079_s22 = smov %s1071_s13 }
 0x193   :  { %487 = vsyncpa [#allocation5], 1 }
 0x194   :  { %489 = vsyncpa [#allocation5 + $0x1], 1 }

</bundles_post_ra>
